<compile_context>
chip_gen: v7x
topology: tpu7x:2x2x1
jax: 0.10.0
libtpu: 0.0.40
codegen_flags: <defaults>
</compile_context>

<pallas_src>
import functools

import jax
import jax.numpy as jnp
from jax.experimental import pallas as pl
from jax.experimental.pallas import tpu as pltpu


def _is_v7_tpu():
    try:
        kind = jax.devices()[0].device_kind.lower()
    except Exception:
        return False
    return "v7" in kind


_IS_V7X = _is_v7_tpu()


def _pick_tiles(n, c, itemsize, target_block_bytes):
    """Pick (tile_n, tile_c): one input block ~target_block_bytes, (8,128)-legal."""
    if c * itemsize * 8 <= target_block_bytes:
        tile_c = c                       # whole class axis fits in one tile
    else:
        tile_c = 2048                    # multiple of 128 -> online LSE over C tiles
    rows = target_block_bytes // (tile_c * itemsize)
    rows = max(8, (rows // 8) * 8)
    rows = min(rows, 1024)
    tile_n = n if rows >= n else rows    # == n (full dim) or multiple of 8
    return int(tile_n), int(tile_c)


def _ce_single_tile_kernel(logits_ref, targets_ref, loss_ref, *, normalized):
    """Whole class axis in one block: one-pass LSE, no scratch, no phase gates."""
    x = logits_ref[...].astype(jnp.float32)
    t = targets_ref[...].astype(jnp.float32)

    m = jnp.max(x, axis=1, keepdims=True)
    lse = m + jnp.log(jnp.sum(jnp.exp(x - m), axis=1, keepdims=True))
    tx = jnp.sum(t * x, axis=1, keepdims=True)
    if normalized:
        loss = lse - tx
    else:
        loss = jnp.sum(t, axis=1, keepdims=True) * lse - tx
    loss_ref[...] = loss.astype(loss_ref.dtype)


def _ce_multi_tile_kernel(logits_ref, targets_ref, loss_ref,
                          m_sc, se_sc, tx_sc, ts_sc,
                          *, c_total, tile_c, normalized):
    """Online log-sum-exp accumulated over the class grid axis (axis 1 of the grid)."""
    ci = pl.program_id(1)

    @pl.when(ci == 0)
    def _init():
        m_sc[...] = jnp.full_like(m_sc, -jnp.inf)   # running max
        se_sc[...] = jnp.zeros_like(se_sc)          # running sum(exp(x - m))
        tx_sc[...] = jnp.zeros_like(tx_sc)          # running sum(t * x)
        ts_sc[...] = jnp.zeros_like(ts_sc)          # running sum(t)

    x = logits_ref[...].astype(jnp.float32)
    t = targets_ref[...].astype(jnp.float32)

    if c_total % tile_c != 0:
        # Partial last class tile: mask out-of-bounds lanes in-kernel instead of
        # padding the full inputs in HBM.  Large-but-finite fill keeps 0 * fill == 0.
        col = ci * tile_c + jax.lax.broadcasted_iota(jnp.int32, x.shape, 1)
        valid = col < c_total
        x = jnp.where(valid, x, jnp.float32(-1e30))
        t = jnp.where(valid, t, jnp.float32(0.0))

    # online log-sum-exp over the class axis (lanes)
    m_prev = m_sc[...]
    m_new = jnp.maximum(m_prev, jnp.max(x, axis=1, keepdims=True))
    se_sc[...] = (se_sc[...] * jnp.exp(m_prev - m_new)
                  + jnp.sum(jnp.exp(x - m_new), axis=1, keepdims=True))
    m_sc[...] = m_new

    # soft-label terms (independent of the running max)
    tx_sc[...] += jnp.sum(t * x, axis=1, keepdims=True)
    if not normalized:
        ts_sc[...] += jnp.sum(t, axis=1, keepdims=True)

    @pl.when(ci == pl.num_programs(1) - 1)
    def _finalize():
        # loss = -sum(t * (x - lse)) = sum(t) * lse - sum(t * x)
        lse = m_sc[...] + jnp.log(se_sc[...])
        if normalized:
            loss_ref[...] = (lse - tx_sc[...]).astype(loss_ref.dtype)
        else:
            loss_ref[...] = (ts_sc[...] * lse - tx_sc[...]).astype(loss_ref.dtype)


@functools.partial(jax.jit, static_argnames=("tile_n", "tile_c", "targets_normalized"))
def ce_soft_label(outputs, targets, *, tile_n=None, tile_c=None,
                  targets_normalized=False):
    """Pallas implementation of CE_Soft_Label.forward.

    Args:
      outputs: (N, C) logits (f32/bf16/f16).
      targets: (N, C) soft labels.
      tile_n, tile_c: optional tile overrides (tile_n multiple of 8 or == N,
        tile_c multiple of 128 or == C).  Auto-tuned per chip if None.
      targets_normalized: set True when each target row sums to 1 to skip the
        sum(t) reduction (fast path).
    Returns:
      (N,) float32 per-sample loss (the value the PyTorch forward returns).
    """
    n, c = outputs.shape
    assert targets.shape == (n, c)

    itemsize = max(jnp.dtype(outputs.dtype).itemsize,
                   jnp.dtype(targets.dtype).itemsize)

    # v5e/v6e have 128 MiB VMEM -> bigger blocks; v7x has 64 MiB physical.
    target_block_bytes = (2 << 20) if _IS_V7X else (4 << 20)
    auto_n, auto_c = _pick_tiles(n, c, itemsize, target_block_bytes)
    tile_n = auto_n if tile_n is None else int(tile_n)
    tile_c = auto_c if tile_c is None else int(tile_c)

    # Enforce the (8, 128) tiling rule: tile == full dim, or multiple of 8/128.
    tile_n = min(tile_n, n)
    tile_c = min(tile_c, c)
    if tile_n < n:
        tile_n = max(8, (tile_n // 8) * 8)
    if tile_c < c:
        tile_c = max(128, (tile_c // 128) * 128)

    row_tiles = pl.cdiv(n, tile_n)
    col_tiles = pl.cdiv(c, tile_c)

    # VMEM budget: 2 pipeline buffers per input + ~4 f32-sized upcast/exp/t*x
    # temporaries + headroom; capped per chip generation.
    block_elems = tile_n * tile_c
    in_bytes_per_elem = (jnp.dtype(outputs.dtype).itemsize
                         + jnp.dtype(targets.dtype).itemsize)
    vmem_needed = (2 * block_elems * in_bytes_per_elem
                   + 4 * block_elems * 4
                   + (4 << 20))
    vmem_cap = (32 << 20) if _IS_V7X else (64 << 20)
    vmem_limit_bytes = int(min(vmem_cap, max(16 << 20, vmem_needed)))

    # Row axis: genuinely split across the two v7x TensorCores (bandwidth-bound
    # kernel, each core has its own DMA path).  Plain "parallel" elsewhere.
    # TODO(synk): verify CORE_PARALLEL grid-extent constraints on real v7x HW.
    if _IS_V7X and row_tiles >= 2 and hasattr(pltpu, "CORE_PARALLEL"):
        row_sem = pltpu.CORE_PARALLEL
        red_sem = pltpu.ARBITRARY
    else:
        row_sem = "parallel"
        red_sem = "arbitrary"

    if col_tiles == 1:
        # Fast path: tile_c == C. No scratch accumulators, no pl.when gates.
        kernel = functools.partial(_ce_single_tile_kernel,
                                   normalized=targets_normalized)
        loss2d = pl.pallas_call(
            kernel,
            out_shape=jax.ShapeDtypeStruct((n, 1), jnp.float32),
            grid_spec=pltpu.PrefetchScalarGridSpec(
                num_scalar_prefetch=0,
                grid=(row_tiles,),
                in_specs=[
                    pl.BlockSpec((tile_n, tile_c), lambda i: (i, 0)),
                    pl.BlockSpec((tile_n, tile_c), lambda i: (i, 0)),
                ],
                out_specs=pl.BlockSpec((tile_n, 1), lambda i: (i, 0)),
            ),
            compiler_params=pltpu.CompilerParams(
                dimension_semantics=(row_sem,),
                vmem_limit_bytes=vmem_limit_bytes,
            ),
        )(outputs, targets)
    else:
        kernel = functools.partial(_ce_multi_tile_kernel,
                                   c_total=c, tile_c=tile_c,
                                   normalized=targets_normalized)
        loss2d = pl.pallas_call(
            kernel,
            out_shape=jax.ShapeDtypeStruct((n, 1), jnp.float32),
            grid_spec=pltpu.PrefetchScalarGridSpec(
                num_scalar_prefetch=0,
                grid=(row_tiles, col_tiles),
                in_specs=[
                    pl.BlockSpec((tile_n, tile_c), lambda i, j: (i, j)),
                    pl.BlockSpec((tile_n, tile_c), lambda i, j: (i, j)),
                ],
                # output block is revisited across the class (reduction) axis;
                # written only on the last class step.
                out_specs=pl.BlockSpec((tile_n, 1), lambda i, j: (i, 0)),
                scratch_shapes=[pltpu.VMEM((tile_n, 1), jnp.float32)] * 4,
            ),
            compiler_params=pltpu.CompilerParams(
                dimension_semantics=(row_sem, red_sem),
                vmem_limit_bytes=vmem_limit_bytes,
            ),
        )(outputs, targets)

    return loss2d[:, 0]


if __name__ == "__main__":
    key = jax.random.PRNGKey(0)
    k1, k2, k3, k4 = jax.random.split(key, 4)

    # small shapes consistent with the module: (batch, num_classes)
    N, C = 8, 32
    outputs = jax.random.normal(k1, (N, C), dtype=jnp.float32)
    targets = jax.nn.softmax(jax.random.normal(k2, (N, C), dtype=jnp.float32), axis=1)

    loss_vec = ce_soft_label(outputs, targets)          # single-class-tile fast path
    jax.block_until_ready(loss_vec)

    ref = -jnp.sum(jax.nn.log_softmax(outputs, axis=1) * targets, axis=1)
    assert loss_vec.shape == (N,)
    assert jnp.allclose(loss_vec, ref, atol=1e-4, rtol=1e-5)

    # normalized-targets fast path (sum(t) == 1 per row)
    loss_norm = ce_soft_label(outputs, targets, targets_normalized=True)
    jax.block_until_ready(loss_norm)
    assert jnp.allclose(loss_norm, ref, atol=1e-4, rtol=1e-5)

    # multi-tile path: partial last row tile and partial (masked) last class tile,
    # no wrapper-side padding of the inputs.
    N2, C2 = 40, 300
    outputs2 = jax.random.normal(k3, (N2, C2), dtype=jnp.float32)
    targets2 = jax.nn.softmax(jax.random.normal(k4, (N2, C2), dtype=jnp.float32), axis=1)
    loss2 = ce_soft_label(outputs2, targets2, tile_n=16, tile_c=128)
    jax.block_until_ready(loss2)

    ref2 = -jnp.sum(jax.nn.log_softmax(outputs2, axis=1) * targets2, axis=1)
    assert loss2.shape == (N2,)
    assert jnp.allclose(loss2, ref2, atol=1e-4, rtol=1e-5)

    print("KERNEL_OK")
</pallas_src>

<mosaic_0001>
module attributes {stable_mosaic.version = 11 : i64} {
  func.func @_ce_single_tile_kernel(%arg0: i32, %arg1: memref<8x32xf32, #tpu.memory_space<vmem>>, %arg2: memref<8x32xf32, #tpu.memory_space<vmem>>, %arg3: memref<8x1xf32, #tpu.memory_space<vmem>>) attributes {dimension_semantics = [#tpu.dimension_semantics<parallel>], iteration_bounds = array<i64: 1>, scalar_prefetch = 0 : i64, scratch_operands = 0 : i64, tpu.core_type = #tpu.core_type<tc>, window_params = [{transform_indices = @transform_0, window_bounds = array<i64: 8, 32>}, {transform_indices = @transform_1, window_bounds = array<i64: 8, 32>}, {transform_indices = @transform_2, window_bounds = array<i64: 8, 1>}]} {
    %c0 = arith.constant 0 : index
    %c0_0 = arith.constant 0 : index
    %0 = vector.load %arg1[%c0, %c0_0] : memref<8x32xf32, #tpu.memory_space<vmem>>, vector<8x32xf32>
    %c0_1 = arith.constant 0 : index
    %c0_2 = arith.constant 0 : index
    %1 = vector.load %arg2[%c0_1, %c0_2] : memref<8x32xf32, #tpu.memory_space<vmem>>, vector<8x32xf32>
    %cst = arith.constant dense<0xFF800000> : vector<8xf32>
    %2 = vector.multi_reduction <maximumf>, %0, %cst [1] : vector<8x32xf32> to vector<8xf32>
    %3 = vector.shape_cast %2 : vector<8xf32> to vector<8x1xf32>
    %4 = vector.broadcast %3 : vector<8x1xf32> to vector<8x32xf32>
    %5 = arith.subf %0, %4 : vector<8x32xf32>
    %6 = math.exp %5 : vector<8x32xf32>
    %cst_3 = arith.constant dense<0.000000e+00> : vector<8xf32>
    %7 = vector.multi_reduction <add>, %6, %cst_3 [1] : vector<8x32xf32> to vector<8xf32>
    %8 = vector.shape_cast %7 : vector<8xf32> to vector<8x1xf32>
    %9 = math.log %8 : vector<8x1xf32>
    %10 = arith.addf %3, %9 : vector<8x1xf32>
    %11 = arith.mulf %1, %0 : vector<8x32xf32>
    %cst_4 = arith.constant dense<0.000000e+00> : vector<8xf32>
    %12 = vector.multi_reduction <add>, %11, %cst_4 [1] : vector<8x32xf32> to vector<8xf32>
    %13 = vector.shape_cast %12 : vector<8xf32> to vector<8x1xf32>
    %cst_5 = arith.constant dense<0.000000e+00> : vector<8xf32>
    %14 = vector.multi_reduction <add>, %1, %cst_5 [1] : vector<8x32xf32> to vector<8xf32>
    %15 = vector.shape_cast %14 : vector<8xf32> to vector<8x1xf32>
    %16 = arith.mulf %15, %10 : vector<8x1xf32>
    %17 = arith.subf %16, %13 : vector<8x1xf32>
    %c0_6 = arith.constant 0 : index
    %c0_7 = arith.constant 0 : index
    %18 = vector.load %arg3[%c0_6, %c0_7] : memref<8x1xf32, #tpu.memory_space<vmem>>, vector<8x1xf32>
    tpu.vector_store %arg3[%c0_6, %c0_7], %17 {strides = array<i32>} : memref<8x1xf32, #tpu.memory_space<vmem>>, vector<8x1xf32>,
    return
  }
  func.func @transform_0(%arg0: i32) -> (i32, i32) {
    %c0_i32 = arith.constant 0 : i32
    %c0_i32_0 = arith.constant 0 : i32
    return %arg0, %c0_i32 : i32, i32
  }
  func.func @transform_1(%arg0: i32) -> (i32, i32) {
    %c0_i32 = arith.constant 0 : i32
    %c0_i32_0 = arith.constant 0 : i32
    return %arg0, %c0_i32 : i32, i32
  }
  func.func @transform_2(%arg0: i32) -> (i32, i32) {
    %c0_i32 = arith.constant 0 : i32
    %c0_i32_0 = arith.constant 0 : i32
    return %arg0, %c0_i32 : i32, i32
  }
}

</mosaic_0001>

<bundles_post_ra>
// kernel: ce_soft_label.1
= control target key start
LH: loop header
LB: loop body
LE: loop exit
PB: predicated region body
PF: predicated region fallthrough
CT: control target
= control target key end

     0   :  { %7 = vsyncpa [#allocation3], 0  ;;  %s165_s0 = inlined_call_operand.hbm [shape: f32[8,32], index: 0, kind: input, shape index: {}]   ;;  %s166_s1 = inlined_call_operand.hbm [shape: f32[8,32], index: 1, kind: input, shape index: {}]   ;;  %s167_s2 = inlined_call_operand.vmem [shape: f32[8,1], index: 2, kind: output, shape index: {}]  }
   0x1   :  { %8 = vsyncpa [#allocation5], 0  ;;  %s121_s9 = smov [#allocation2]   ;;  %s122_s11 = smov [#allocation4]  }
   0x2   :  { %s15_s10 = sshll.u32 %s121_s9, 4  ;;  %s25_s12 = sshll.u32 %s122_s11, 4  ;;  %s16_s10 = int_to_ptr.vmem [resolvable:$true] %s15_s10  ;;  %s26_s12 = int_to_ptr.vmem [resolvable:$true] %s25_s12 }
   0x3   :  { %s73_s15 = scalar_lea.hbm %s165_s0, 128 }
   0x4   :  { %p74_p0 = scmp.ne.s32.totalorder %s165_s0, %s73_s15  ;;  %p77_p1 = scmp.lt.u32.totalorder %s73_s15, %s165_s0 }
   0x6   :  { %p79_p2 = pnand %p77_p1, %p74_p0 }
   0x8   :  { %82 = shalt.err (!%p79_p2)
}
   0x9   :  { %s83_s20 = scalar_lea.vmem %s16_s10, 128  ;;  %p88_p4 = scmp.lt.s32.totalorder %s16_s10, %s16_s10 }
   0xa   :  { %p84_p3 = scmp.ne.s32.totalorder %s16_s10, %s83_s20  ;;  %p89_p5 = scmp.lt.s32.totalorder %s83_s20, %s83_s20 }
   0xc   :  { %p90_p6 = por %p89_p5, %p88_p4 }
   0xe   :  { %p91_p7 = pnand %p90_p6, %p84_p3 }
  0x10   :  { %94 = shalt.err (!%p91_p7)
}
  0x11   :  { %18 = dma.hbm_to_vmem [thread:$0]  %s165_s0, 128, %s16_s10, [#allocation3]  }
  0x12   :  { %s95_s25 = scalar_lea.hbm %s166_s1, 128 }
  0x13   :  { %p96_p8 = scmp.ne.s32.totalorder %s166_s1, %s95_s25  ;;  %p99_p9 = scmp.lt.u32.totalorder %s95_s25, %s166_s1 }
  0x15   :  { %p101_p10 = pnand %p99_p9, %p96_p8 }
  0x17   :  { %104 = shalt.err (!%p101_p10)
}
  0x18   :  { %s105_s30 = scalar_lea.vmem %s26_s12, 128  ;;  %p110_p12 = scmp.lt.s32.totalorder %s26_s12, %s26_s12 }
  0x19   :  { %p106_p11 = scmp.ne.s32.totalorder %s26_s12, %s105_s30  ;;  %p111_p13 = scmp.lt.s32.totalorder %s105_s30, %s105_s30 }
  0x1b   :  { %p112_p0 = por %p111_p13, %p110_p12 }
  0x1d   :  { %p113_p1 = pnand %p112_p0, %p106_p11 }
  0x1f   :  { %116 = shalt.err (!%p113_p1)
}
  0x20   :  { %28 = dma.hbm_to_vmem [thread:$0]  %s166_s1, 128, %s26_s12, [#allocation5]  }
  0x21   :  { %117 = dma.done.wait [#allocation3], 128  }
  0x22   :  { %118 = vsyncadd [#allocation3], 4294967168 }
  0x23   :  { %119 = dma.done.wait [#allocation5], 128  }
  0x24   :  { %120 = vsyncadd [#allocation5], 4294967168  ;;  %vm37_vm0 = vcmask 261120   ;;  %v35_v0 = vld [vmem:[#allocation2] sm:$0xff]  ;;  %v36_v2 = vld [vmem:[#allocation4] sm:$0xff]  ;;  %vm59_vm1 = vcmask 7168  }
  0x25   :  { %v38_v1 = vsel %vm37_vm0, %v35_v0, -inf  ;;  %v54_v3 = vsel %vm37_vm0, %v36_v2, 0.0  ;;  %v50_v4 = vmul.f32 %v36_v2, %v35_v0 }
  0x26   :  { %39 = vmax.xlane.f32.xlu0 %v38_v1  ;;  %55 = vadd.xlane.f32.xlu1 %v54_v3 }
  0x27   :  { %v51_v5 = vsel %vm37_vm0, %v50_v4, 0.0 }
  0x2a   :  { %52 = vadd.xlane.f32.xlu1 %v51_v5 }
  0xb3   :  { %v40_v6 = vpop.xlane.xlu0 %39  ;;  %v56_v12 = vpop.xlane.xlu1 %55 }
  0xb4   :  { %v41_v7 = vsub.f32 %v35_v0, %v40_v6 }
  0xb6   :  { %v42_v8 = vmul.f32 1.442695, %v41_v7 }
  0xb7   :  { %v53_v16 = vpop.xlane.xlu1 %52 }
  0xb8   :  { %69 = vpow2.f32 %v42_v8 }
  0xc2   :  { %v70_v9 = vpop.eup %69 }
  0xc3   :  { %v44_v10 = vsel %vm37_vm0, %v70_v9, 0.0 }
  0xc4   :  { %45 = vadd.xlane.f32.xlu0 %v44_v10 }
 0x151   :  { %v46_v11 = vpop.xlane.xlu0 %45 }
 0x152   :  { %71 = vlog2.f32 %v46_v11 }
 0x15c   :  { %v72_v13 = vpop.eup %71 }
 0x15d   :  { %v48_v14 = vmul.f32 0.6931472, %v72_v13 }
 0x15f   :  { %v49_v15 = vadd.f32 %v48_v14, %v40_v6 }
 0x161   :  { %v57_v17 = vmul.f32 %v56_v12, %v49_v15 }
 0x163   :  { %v58_v18 = vsub.f32 %v57_v17, %v53_v16 }
 0x165   :  { %60 = vst.msk [vmem:[%s167_s2] sm:$0xff] %vm59_vm1, %v58_v18 }
 0x166   :  { %65 = vsyncpa [#allocation3], 1 }
 0x167   :  { %66 = vsyncpa [#allocation5], 1 }

</bundles_post_ra>
